<compile_context>
chip_gen: v7x
topology: tpu7x:2x2x1
jax: 0.10.0
libtpu: 0.0.40
codegen_flags: <defaults>
</compile_context>

<pallas_src>
import jax
import jax.numpy as jnp
from jax.experimental import pallas as pl
from jax.experimental.pallas import tpu as pltpu


def _round_up(x: int, m: int) -> int:
    return ((x + m - 1) // m) * m


# --- index maps (module-level so repeated eager calls hit the same cache) ---
def _slab_index_map(i):
    return (i, 0)


def _const_index_map(i):
    return (0, 0)


def _out_index_map(i):
    return (0, i, 0)


def _model_kernel(x1_ref, x2_ref, p_ref, m_ref, b_ref, out_ref):
    # x1_ref, x2_ref: (bt, 256) lane-dense input slabs
    # p_ref, m_ref:   (256, 256) precomputed permutation / folded-weight mats
    # b_ref:          (1, 256) tiled bias
    # out_ref:        (2, bt, 256) lane-dense stacked output block
    v1 = jnp.dot(x1_ref[...], p_ref[...], preferred_element_type=jnp.float32)
    v2 = jnp.dot(x2_ref[...], m_ref[...], preferred_element_type=jnp.float32)
    v2 = v2 + b_ref[...]
    out_ref[0] = v1.astype(out_ref.dtype)
    out_ref[1] = v2.astype(out_ref.dtype)


def _pallas_forward(x1f, x2f, P, M, b_tile, *, Bp, bt, grid, cost,
                    single_buffer_residents):
    # P / M / bias have constant index maps; request a single VMEM buffer for
    # them instead of the default double-buffering (small VMEM headroom win).
    res_kw = ({"pipeline_mode": pl.Buffered(1)}
              if single_buffer_residents else {})
    return pl.pallas_call(
        _model_kernel,
        out_shape=jax.ShapeDtypeStruct((2, Bp, 256), jnp.float32),
        grid_spec=pltpu.PrefetchScalarGridSpec(
            num_scalar_prefetch=0,
            grid=grid,
            in_specs=[
                pl.BlockSpec((bt, 256), _slab_index_map),              # x1
                pl.BlockSpec((bt, 256), _slab_index_map),              # x2
                pl.BlockSpec((256, 256), _const_index_map, **res_kw),  # P
                pl.BlockSpec((256, 256), _const_index_map, **res_kw),  # M
                pl.BlockSpec((1, 256), _const_index_map, **res_kw),    # bias
            ],
            out_specs=pl.BlockSpec((2, bt, 256), _out_index_map),
        ),
        compiler_params=pltpu.CompilerParams(
            dimension_semantics=("parallel",),
            vmem_limit_bytes=48 * 1024 * 1024,
        ),
        cost_estimate=cost,
    )(x1f, x2f, P, M, b_tile)


# Flipped to False the first time pipeline_mode=pl.Buffered(1) is rejected by
# the installed jax version / backend; the kernel then uses default buffering.
_SINGLE_BUFFER_RESIDENTS = True


def model_forward(x1, x2, w, b, *, block_b=2048):
    """x1, x2: (B, 16, 16); w: (16, 16); b: (16,) -> (2, B, 16, 16)."""
    global _SINGLE_BUFFER_RESIDENTS
    B, D, S = x1.shape
    assert x2.shape == (B, D, S) and (D, S) == (16, 16)
    f32 = jnp.float32

    # --- wrapper-side layout plumbing (free reshapes) ----------------------
    x1f = x1.astype(f32).reshape(B, 256)
    x2f = x2.astype(f32).reshape(B, 256)

    # --- weight preprocessing (done once, outside the grid) ----------------
    eye = jnp.eye(16, dtype=f32)
    # P[d*16+s, S*16+Dd] = delta(s,S) * delta(d,Dd)  -> flat permute(0,2,1)
    P = jnp.einsum("sS,dD->dsSD", eye, eye).reshape(256, 256)
    # M[d*16+s, S*16+o]  = delta(s,S) * W[o,d]       -> flat permute + x @ W^T
    M = jnp.einsum("sS,od->dsSo", eye, w.astype(f32)).reshape(256, 256)
    # b_tile[s*16+o] = b[o]
    b_tile = jnp.tile(b.astype(f32), 16).reshape(1, 256)

    # --- batch tiling -------------------------------------------------------
    # Pad only to sublane granularity (multiple of 8). Block-granularity
    # raggedness in the final grid step is handled by Pallas boundary masking,
    # so the common B % 8 == 0 case has no padding and no post-kernel slice
    # copy of the (memory-bound) output.
    Bp = _round_up(max(B, 1), 8)
    if Bp != B:
        pad = ((0, Bp - B), (0, 0))
        x1f = jnp.pad(x1f, pad)
        x2f = jnp.pad(x2f, pad)

    bt = max(8, min(_round_up(block_b, 8), Bp))
    if Bp >= 16:
        # v7x: guarantee >= 2 grid blocks so the "parallel" axis can shard
        # across both TensorCores (a single block would idle one TC).
        bt = min(bt, _round_up(pl.cdiv(Bp, 2), 8))
    grid = (pl.cdiv(Bp, bt),)
    # VMEM @ bt=2048: (2 + 2 + 4) MiB slabs double-buffered = 16 MiB, plus
    # ~0.5 MiB resident P/M -> under the 48 MiB limit and v7x's 64 MiB VMEM.

    # Advisory cost: the *true* module cost (linear flops, lane-dense bytes),
    # so XLA overlaps this short memory-bound call with surrounding ops.
    cost = pl.CostEstimate(
        flops=2 * 16 * 16 * 16 * B,      # F.linear: 2*K*M*N per batch row
        transcendentals=0,
        bytes_accessed=4 * 4 * 256 * B,  # x1 + x2 + 2x output rows, f32
    )

    kwargs = dict(Bp=Bp, bt=bt, grid=grid, cost=cost)
    out_flat = None
    if _SINGLE_BUFFER_RESIDENTS:
        try:
            out_flat = _pallas_forward(x1f, x2f, P, M, b_tile,
                                       single_buffer_residents=True, **kwargs)
        except Exception:
            # pipeline_mode=Buffered(1) unsupported here; fall back to the
            # previously-validated default-buffering configuration.
            _SINGLE_BUFFER_RESIDENTS = False
    if out_flat is None:
        out_flat = _pallas_forward(x1f, x2f, P, M, b_tile,
                                   single_buffer_residents=False, **kwargs)

    out = out_flat if Bp == B else out_flat[:, :B]
    return out.reshape(2, B, 16, 16)


if __name__ == "__main__":
    key = jax.random.PRNGKey(0)
    k_x1, k_x2, k_w, k_b, k_y1, k_y2, k_z1, k_z2 = jax.random.split(key, 8)

    # Deterministic nn.Linear(16, 16)-style init: U(-1/sqrt(16), 1/sqrt(16))
    bound = 1.0 / jnp.sqrt(16.0)
    w = jax.random.uniform(k_w, (16, 16), jnp.float32, -bound, bound)
    b = jax.random.uniform(k_b, (16,), jnp.float32, -bound, bound)

    def ref_fn(a1, a2):
        v1 = jnp.transpose(a1, (0, 2, 1))
        v2 = jnp.einsum("bds,od->bso", a2, w,
                        precision=jax.lax.Precision.HIGHEST) + b
        return jnp.stack([v1, v2])

    # Case 1: tiny batch (B < 8 -> sublane padding path, single grid block).
    B = 2
    x1 = jax.random.normal(k_x1, (B, 16, 16), dtype=jnp.float32)
    x2 = jax.random.normal(k_x2, (B, 16, 16), dtype=jnp.float32)
    out = jax.block_until_ready(model_forward(x1, x2, w, b))
    assert out.shape == (2, B, 16, 16)
    assert jnp.allclose(out, ref_fn(x1, x2), atol=1e-4, rtol=1e-4)

    # Case 2: default tiling at small B -> >=2 grid blocks (v7x clamp) with a
    # ragged, masked final block (no padding / no output slice copy).
    B2 = 24
    y1 = jax.random.normal(k_y1, (B2, 16, 16), dtype=jnp.float32)
    y2 = jax.random.normal(k_y2, (B2, 16, 16), dtype=jnp.float32)
    out2 = jax.block_until_ready(model_forward(y1, y2, w, b))
    assert out2.shape == (2, B2, 16, 16)
    assert jnp.allclose(out2, ref_fn(y1, y2), atol=1e-4, rtol=1e-4)

    # Case 3: explicit small tile -> 3 grid blocks, masked ragged final block.
    B3 = 40
    z1 = jax.random.normal(k_z1, (B3, 16, 16), dtype=jnp.float32)
    z2 = jax.random.normal(k_z2, (B3, 16, 16), dtype=jnp.float32)
    out3 = jax.block_until_ready(model_forward(z1, z2, w, b, block_b=16))
    assert out3.shape == (2, B3, 16, 16)
    assert jnp.allclose(out3, ref_fn(z1, z2), atol=1e-4, rtol=1e-4)

    print("KERNEL_OK")
</pallas_src>

<mosaic_0001>
module attributes {stable_mosaic.version = 11 : i64} {
  func.func @_model_kernel(%arg0: i32, %arg1: memref<8x256xf32, #tpu.memory_space<vmem>>, %arg2: memref<8x256xf32, #tpu.memory_space<vmem>>, %arg3: memref<256x256xf32, #tpu.memory_space<vmem>>, %arg4: memref<256x256xf32, #tpu.memory_space<vmem>>, %arg5: memref<1x256xf32, #tpu.memory_space<vmem>>, %arg6: memref<2x8x256xf32, #tpu.memory_space<vmem>>) attributes {dimension_semantics = [#tpu.dimension_semantics<parallel>], iteration_bounds = array<i64: 1>, scalar_prefetch = 0 : i64, scratch_operands = 0 : i64, tpu.core_type = #tpu.core_type<tc>, window_params = [{transform_indices = @transform_0, window_bounds = array<i64: 8, 256>}, {transform_indices = @transform_1, window_bounds = array<i64: 8, 256>}, {pipeline_mode = #tpu.pipeline_mode<synchronous>, transform_indices = @transform_2, window_bounds = array<i64: 256, 256>}, {pipeline_mode = #tpu.pipeline_mode<synchronous>, transform_indices = @transform_3, window_bounds = array<i64: 256, 256>}, {pipeline_mode = #tpu.pipeline_mode<synchronous>, transform_indices = @transform_4, window_bounds = array<i64: 1, 256>}, {transform_indices = @transform_5, window_bounds = array<i64: 2, 8, 256>}]} {
    %c0 = arith.constant 0 : index
    %c0_0 = arith.constant 0 : index
    %0 = vector.load %arg1[%c0, %c0_0] : memref<8x256xf32, #tpu.memory_space<vmem>>, vector<8x256xf32>
    %c0_1 = arith.constant 0 : index
    %c0_2 = arith.constant 0 : index
    %1 = vector.load %arg3[%c0_1, %c0_2] : memref<256x256xf32, #tpu.memory_space<vmem>>, vector<256x256xf32>
    %cst = arith.constant dense<0.000000e+00> : vector<8x256xf32>
    %2 = tpu.matmul %0, %1, %cst {dimension_numbers = #tpu.dot_dimension_numbers<[1], [0], [0], [1], [0, 0, 1, 1], [], []>} : vector<8x256xf32>, vector<256x256xf32>, vector<8x256xf32> -> vector<8x256xf32>
    %c0_3 = arith.constant 0 : index
    %c0_4 = arith.constant 0 : index
    %3 = vector.load %arg2[%c0_3, %c0_4] : memref<8x256xf32, #tpu.memory_space<vmem>>, vector<8x256xf32>
    %c0_5 = arith.constant 0 : index
    %c0_6 = arith.constant 0 : index
    %4 = vector.load %arg4[%c0_5, %c0_6] : memref<256x256xf32, #tpu.memory_space<vmem>>, vector<256x256xf32>
    %cst_7 = arith.constant dense<0.000000e+00> : vector<8x256xf32>
    %5 = tpu.matmul %3, %4, %cst_7 {dimension_numbers = #tpu.dot_dimension_numbers<[1], [0], [0], [1], [0, 0, 1, 1], [], []>} : vector<8x256xf32>, vector<256x256xf32>, vector<8x256xf32> -> vector<8x256xf32>
    %c0_8 = arith.constant 0 : index
    %c0_9 = arith.constant 0 : index
    %6 = vector.load %arg5[%c0_8, %c0_9] : memref<1x256xf32, #tpu.memory_space<vmem>>, vector<1x256xf32>
    %7 = vector.broadcast %6 : vector<1x256xf32> to vector<8x256xf32>
    %8 = arith.addf %5, %7 : vector<8x256xf32>
    %c0_10 = arith.constant 0 : index
    %c0_11 = arith.constant 0 : index
    %c0_12 = arith.constant 0 : index
    %9 = vector.load %arg6[%c0_10, %c0_11, %c0_12] : memref<2x8x256xf32, #tpu.memory_space<vmem>>, vector<1x8x256xf32>
    %10 = vector.shape_cast %9 : vector<1x8x256xf32> to vector<8x256xf32>
    %11 = vector.shape_cast %2 : vector<8x256xf32> to vector<1x8x256xf32>
    tpu.vector_store %arg6[%c0_10, %c0_11, %c0_12], %11 {strides = array<i32>} : memref<2x8x256xf32, #tpu.memory_space<vmem>>, vector<1x8x256xf32>,
    %c1 = arith.constant 1 : index
    %c0_13 = arith.constant 0 : index
    %c0_14 = arith.constant 0 : index
    %12 = vector.load %arg6[%c1, %c0_13, %c0_14] : memref<2x8x256xf32, #tpu.memory_space<vmem>>, vector<1x8x256xf32>
    %13 = vector.shape_cast %12 : vector<1x8x256xf32> to vector<8x256xf32>
    %14 = vector.shape_cast %8 : vector<8x256xf32> to vector<1x8x256xf32>
    tpu.vector_store %arg6[%c1, %c0_13, %c0_14], %14 {strides = array<i32>} : memref<2x8x256xf32, #tpu.memory_space<vmem>>, vector<1x8x256xf32>,
    return
  }
  func.func @transform_0(%arg0: i32) -> (i32, i32) {
    %c0_i32 = arith.constant 0 : i32
    %c0_i32_0 = arith.constant 0 : i32
    return %arg0, %c0_i32 : i32, i32
  }
  func.func @transform_1(%arg0: i32) -> (i32, i32) {
    %c0_i32 = arith.constant 0 : i32
    %c0_i32_0 = arith.constant 0 : i32
    return %arg0, %c0_i32 : i32, i32
  }
  func.func @transform_2(%arg0: i32) -> (i32, i32) {
    %c0_i32 = arith.constant 0 : i32
    %c0_i32_0 = arith.constant 0 : i32
    %c0_i32_1 = arith.constant 0 : i32
    return %c0_i32, %c0_i32_0 : i32, i32
  }
  func.func @transform_3(%arg0: i32) -> (i32, i32) {
    %c0_i32 = arith.constant 0 : i32
    %c0_i32_0 = arith.constant 0 : i32
    %c0_i32_1 = arith.constant 0 : i32
    return %c0_i32, %c0_i32_0 : i32, i32
  }
  func.func @transform_4(%arg0: i32) -> (i32, i32) {
    %c0_i32 = arith.constant 0 : i32
    %c0_i32_0 = arith.constant 0 : i32
    %c0_i32_1 = arith.constant 0 : i32
    return %c0_i32, %c0_i32_0 : i32, i32
  }
  func.func @transform_5(%arg0: i32) -> (i32, i32, i32) {
    %c0_i32 = arith.constant 0 : i32
    %c0_i32_0 = arith.constant 0 : i32
    %c0_i32_1 = arith.constant 0 : i32
    return %c0_i32, %arg0, %c0_i32_0 : i32, i32, i32
  }
}

module attributes {stable_mosaic.version = 11 : i64} {
  func.func @_model_kernel(%arg0: i32, %arg1: memref<8x256xf32, #tpu.memory_space<vmem>>, %arg2: memref<8x256xf32, #tpu.memory_space<vmem>>, %arg3: memref<256x256xf32, #tpu.memory_space<vmem>>, %arg4: memref<256x256xf32, #tpu.memory_space<vmem>>, %arg5: memref<1x256xf32, #tpu.memory_space<vmem>>, %arg6: memref<2x8x256xf32, #tpu.memory_space<vmem>>) attributes {dimension_semantics = [#tpu.dimension_semantics<parallel>], iteration_bounds = array<i64: 1>, scalar_prefetch = 0 : i64, scratch_operands = 0 : i64, tpu.core_type = #tpu.core_type<tc>, window_params = [{transform_indices = @transform_0, window_bounds = array<i64: 8, 256>}, {transform_indices = @transform_1, window_bounds = array<i64: 8, 256>}, {pipeline_mode = #tpu.pipeline_mode<synchronous>, transform_indices = @transform_2, window_bounds = array<i64: 256, 256>}, {pipeline_mode = #tpu.pipeline_mode<synchronous>, transform_indices = @transform_3, window_bounds = array<i64: 256, 256>}, {pipeline_mode = #tpu.pipeline_mode<synchronous>, transform_indices = @transform_4, window_bounds = array<i64: 1, 256>}, {transform_indices = @transform_5, window_bounds = array<i64: 2, 8, 256>}]} {
    %c0 = arith.constant 0 : index
    %c0_0 = arith.constant 0 : index
    %0 = vector.load %arg1[%c0, %c0_0] : memref<8x256xf32, #tpu.memory_space<vmem>>, vector<8x256xf32>
    %c0_1 = arith.constant 0 : index
    %c0_2 = arith.constant 0 : index
    %1 = vector.load %arg3[%c0_1, %c0_2] : memref<256x256xf32, #tpu.memory_space<vmem>>, vector<256x256xf32>
    %cst = arith.constant dense<0.000000e+00> : vector<8x256xf32>
    %2 = tpu.matmul %0, %1, %cst {dimension_numbers = #tpu.dot_dimension_numbers<[1], [0], [0], [1], [0, 0, 1, 1], [], []>} : vector<8x256xf32>, vector<256x256xf32>, vector<8x256xf32> -> vector<8x256xf32>
    %c0_3 = arith.constant 0 : index
    %c0_4 = arith.constant 0 : index
    %3 = vector.load %arg2[%c0_3, %c0_4] : memref<8x256xf32, #tpu.memory_space<vmem>>, vector<8x256xf32>
    %c0_5 = arith.constant 0 : index
    %c0_6 = arith.constant 0 : index
    %4 = vector.load %arg4[%c0_5, %c0_6] : memref<256x256xf32, #tpu.memory_space<vmem>>, vector<256x256xf32>
    %cst_7 = arith.constant dense<0.000000e+00> : vector<8x256xf32>
    %5 = tpu.matmul %3, %4, %cst_7 {dimension_numbers = #tpu.dot_dimension_numbers<[1], [0], [0], [1], [0, 0, 1, 1], [], []>} : vector<8x256xf32>, vector<256x256xf32>, vector<8x256xf32> -> vector<8x256xf32>
    %c0_8 = arith.constant 0 : index
    %c0_9 = arith.constant 0 : index
    %6 = vector.load %arg5[%c0_8, %c0_9] : memref<1x256xf32, #tpu.memory_space<vmem>>, vector<1x256xf32>
    %7 = vector.broadcast %6 : vector<1x256xf32> to vector<8x256xf32>
    %8 = arith.addf %5, %7 : vector<8x256xf32>
    %c0_10 = arith.constant 0 : index
    %c0_11 = arith.constant 0 : index
    %c0_12 = arith.constant 0 : index
    %9 = vector.load %arg6[%c0_10, %c0_11, %c0_12] : memref<2x8x256xf32, #tpu.memory_space<vmem>>, vector<1x8x256xf32>
    %10 = vector.shape_cast %9 : vector<1x8x256xf32> to vector<8x256xf32>
    %11 = vector.shape_cast %2 : vector<8x256xf32> to vector<1x8x256xf32>
    tpu.vector_store %arg6[%c0_10, %c0_11, %c0_12], %11 {strides = array<i32>} : memref<2x8x256xf32, #tpu.memory_space<vmem>>, vector<1x8x256xf32>,
    %c1 = arith.constant 1 : index
    %c0_13 = arith.constant 0 : index
    %c0_14 = arith.constant 0 : index
    %12 = vector.load %arg6[%c1, %c0_13, %c0_14] : memref<2x8x256xf32, #tpu.memory_space<vmem>>, vector<1x8x256xf32>
    %13 = vector.shape_cast %12 : vector<1x8x256xf32> to vector<8x256xf32>
    %14 = vector.shape_cast %8 : vector<8x256xf32> to vector<1x8x256xf32>
    tpu.vector_store %arg6[%c1, %c0_13, %c0_14], %14 {strides = array<i32>} : memref<2x8x256xf32, #tpu.memory_space<vmem>>, vector<1x8x256xf32>,
    return
  }
  func.func @transform_0(%arg0: i32) -> (i32, i32) {
    %c0_i32 = arith.constant 0 : i32
    %c0_i32_0 = arith.constant 0 : i32
    return %arg0, %c0_i32 : i32, i32
  }
  func.func @transform_1(%arg0: i32) -> (i32, i32) {
    %c0_i32 = arith.constant 0 : i32
    %c0_i32_0 = arith.constant 0 : i32
    return %arg0, %c0_i32 : i32, i32
  }
  func.func @transform_2(%arg0: i32) -> (i32, i32) {
    %c0_i32 = arith.constant 0 : i32
    %c0_i32_0 = arith.constant 0 : i32
    %c0_i32_1 = arith.constant 0 : i32
    return %c0_i32, %c0_i32_0 : i32, i32
  }
  func.func @transform_3(%arg0: i32) -> (i32, i32) {
    %c0_i32 = arith.constant 0 : i32
    %c0_i32_0 = arith.constant 0 : i32
    %c0_i32_1 = arith.constant 0 : i32
    return %c0_i32, %c0_i32_0 : i32, i32
  }
  func.func @transform_4(%arg0: i32) -> (i32, i32) {
    %c0_i32 = arith.constant 0 : i32
    %c0_i32_0 = arith.constant 0 : i32
    %c0_i32_1 = arith.constant 0 : i32
    return %c0_i32, %c0_i32_0 : i32, i32
  }
  func.func @transform_5(%arg0: i32) -> (i32, i32, i32) {
    %c0_i32 = arith.constant 0 : i32
    %c0_i32_0 = arith.constant 0 : i32
    %c0_i32_1 = arith.constant 0 : i32
    return %c0_i32, %arg0, %c0_i32_0 : i32, i32, i32
  }
}

</mosaic_0001>

<bundles_post_ra>
// kernel: tpu_custom_call.1
= control target key start
LH: loop header
LB: loop body
LE: loop exit
PB: predicated region body
PF: predicated region fallthrough
CT: control target
= control target key end

     0   :  { %10 = vsyncpa [#allocation3], 0  ;;  %s744_s0 = inlined_call_operand.hbm [shape: f32[8,256], index: 0, kind: input, shape index: {}]   ;;  %s745_s1 = inlined_call_operand.hbm [shape: f32[8,256], index: 1, kind: input, shape index: {}]   ;;  %s746_s2 = inlined_call_operand.hbm [shape: f32[256,256], index: 2, kind: input, shape index: {}]   ;;  %s747_s3 = inlined_call_operand.hbm [shape: f32[256,256], index: 3, kind: input, shape index: {}]   ;;  %s748_s4 = inlined_call_operand.vmem [shape: f32[1,256], index: 4, kind: input, shape index: {}]   ;;  %s749_s5 = inlined_call_operand.hbm [shape: f32[2,8,256], index: 5, kind: output, shape index: {}]  }
   0x1   :  { %11 = vsyncpa [#allocation6], 0 }
   0x2   :  { %12 = vsyncpa [#allocation9], 0 }
   0x3   :  { %13 = vsyncpa [#allocation4], 0  ;;  %s635_s18 = smov [#allocation5]   ;;  %s636_s20 = smov [#allocation2]  }
   0x4   :  { %s30_s19 = sshll.u32 %s635_s18, 4  ;;  %s20_s21 = sshll.u32 %s636_s20, 4  ;;  %s31_s19 = int_to_ptr.vmem [resolvable:$true] %s30_s19  ;;  %s21_s21 = int_to_ptr.vmem [resolvable:$true] %s20_s21 }
   0x5   :  { %s517_s24 = scalar_lea.hbm %s745_s1, 256 }
   0x6   :  { %p518_p0 = scmp.ne.s32.totalorder %s745_s1, %s517_s24  ;;  %p521_p1 = scmp.lt.u32.totalorder %s517_s24, %s745_s1 }
   0x8   :  { %p523_p2 = pnand %p521_p1, %p518_p0 }
   0xa   :  { %526 = shalt.err (!%p523_p2)
}
   0xb   :  { %s527_s29 = scalar_lea.vmem %s31_s19, 256  ;;  %p532_p4 = scmp.lt.s32.totalorder %s31_s19, %s31_s19 }
   0xc   :  { %p528_p3 = scmp.ne.s32.totalorder %s31_s19, %s527_s29  ;;  %p533_p5 = scmp.lt.s32.totalorder %s527_s29, %s527_s29 }
   0xe   :  { %p534_p6 = por %p533_p5, %p532_p4 }
  0x10   :  { %p535_p7 = pnand %p534_p6, %p528_p3 }
  0x12   :  { %538 = shalt.err (!%p535_p7)
}
  0x13   :  { %33 = dma.hbm_to_vmem [thread:$0]  %s745_s1, 256, %s31_s19, [#allocation6]  }
  0x14   :  { %s539_s9 = scalar_lea.hbm %s744_s0, 256 }
  0x15   :  { %p540_p8 = scmp.ne.s32.totalorder %s744_s0, %s539_s9  ;;  %p543_p9 = scmp.lt.u32.totalorder %s539_s9, %s744_s0 }
  0x17   :  { %p545_p10 = pnand %p543_p9, %p540_p8 }
  0x19   :  { %548 = shalt.err (!%p545_p10)
}
  0x1a   :  { %s549_s14 = scalar_lea.vmem %s21_s21, 256  ;;  %p554_p12 = scmp.lt.s32.totalorder %s21_s21, %s21_s21 }
  0x1b   :  { %p550_p11 = scmp.ne.s32.totalorder %s21_s21, %s549_s14  ;;  %p555_p13 = scmp.lt.s32.totalorder %s549_s14, %s549_s14 }
  0x1d   :  { %p556_p0 = por %p555_p13, %p554_p12 }
  0x1f   :  { %p557_p1 = pnand %p556_p0, %p550_p11 }
  0x21   :  { %560 = shalt.err (!%p557_p1)
}
  0x22   :  { %23 = dma.hbm_to_vmem [thread:$0]  %s744_s0, 256, %s21_s21, [#allocation3]  }
  0x23   :  { %s637_s16 = smov [#allocation7]   ;;  %s561_s20 = scalar_lea.hbm %s746_s2, 8192 }
  0x24   :  { %s39_s17 = sshll.u32 %s637_s16, 4  ;;  %p562_p2 = scmp.ne.s32.totalorder %s746_s2, %s561_s20  ;;  %s40_s17 = int_to_ptr.vmem [resolvable:$true] %s39_s17 }
  0x25   :  { %p565_p3 = scmp.lt.u32.totalorder %s561_s20, %s746_s2 }
  0x27   :  { %p567_p4 = pnand %p565_p3, %p562_p2 }
  0x29   :  { %570 = shalt.err (!%p567_p4)
}
  0x2a   :  { %s571_s26 = scalar_lea.vmem %s40_s17, 8192  ;;  %p576_p6 = scmp.lt.s32.totalorder %s40_s17, %s40_s17 }
  0x2b   :  { %p572_p5 = scmp.ne.s32.totalorder %s40_s17, %s571_s26  ;;  %p577_p7 = scmp.lt.s32.totalorder %s571_s26, %s571_s26 }
  0x2d   :  { %p578_p8 = por %p577_p7, %p576_p6 }
  0x2f   :  { %p579_p9 = pnand %p578_p8, %p572_p5 }
  0x31   :  { %582 = shalt.err (!%p579_p9)
}
  0x32   :  { %s638_s0 = smov 256   ;;  %s639_s21 = smov 16  }
  0x33   :  { %45 = dma.hbm_to_vmem [thread:$0]  %s746_s2, 8192, %s40_s17, [#allocation6], %s638_s0, %s638_s0, %s639_s21  }
  0x34   :  { %s640_s29 = smov [#allocation8]   ;;  %s583_s8 = scalar_lea.hbm %s747_s3, 8192 }
  0x35   :  { %s51_s30 = sshll.u32 %s640_s29, 4  ;;  %p584_p10 = scmp.ne.s32.totalorder %s747_s3, %s583_s8  ;;  %s52_s30 = int_to_ptr.vmem [resolvable:$true] %s51_s30 }
  0x36   :  { %p587_p11 = scmp.lt.u32.totalorder %s583_s8, %s747_s3 }
  0x38   :  { %p589_p12 = pnand %p587_p11, %p584_p10 }
  0x3a   :  { %592 = shalt.err (!%p589_p12)
}
  0x3b   :  { %s593_s13 = scalar_lea.vmem %s52_s30, 8192  ;;  %p598_p0 = scmp.lt.s32.totalorder %s52_s30, %s52_s30 }
  0x3c   :  { %p594_p13 = scmp.ne.s32.totalorder %s52_s30, %s593_s13  ;;  %p599_p1 = scmp.lt.s32.totalorder %s593_s13, %s593_s13 }
  0x3e   :  { %p600_p2 = por %p599_p1, %p598_p0 }
  0x40   :  { %p601_p3 = pnand %p600_p2, %p594_p13 }
  0x42   :  { %604 = shalt.err (!%p601_p3)
}
  0x43   :  { %57 = dma.hbm_to_vmem [thread:$0]  %s747_s3, 8192, %s52_s30, [#allocation9], %s638_s0, %s638_s0, %s639_s21  }
  0x44   :  { %627 = dma.done.wait [#allocation3], 256  }
  0x45   :  { %628 = vsyncadd [#allocation3], 4294967040 }
  0x46   :  { %629 = dma.done.wait [#allocation6], 8448  }
  0x47   :  { %630 = vsyncadd [#allocation6], 4294958848 }
  0x48   :  { %631 = dma.done.wait [#allocation9], 8192  }
  0x49   :  { %632 = vsyncadd [#allocation9], 4294959104  ;;  %v212_v0 = vld [vmem:[#allocation8 + $0x8] sm:$0xff]  ;;  %v214_v1 = vld [vmem:[#allocation8 + $0x18] sm:$0xff]  ;;  %s641_s15 = smov [#allocation10]  }
  0x4a   :  { %v75_v2 = vld [vmem:[#allocation7 + $0x8] sm:$0xff]  ;;  %v446_v3 = vpack.c.bf16 %v214_v1, %v212_v0  ;;  %v77_v4 = vld [vmem:[#allocation7 + $0x18] sm:$0xff]  ;;  %v211_v5 = vld [vmem:[#allocation8] sm:$0xff]  ;;  %s368_s16 = sshll.u32 %s641_s15, 4  ;;  %s369_s16 = int_to_ptr.vmem [resolvable:$true] %s368_s16 }
  0x4b   :  { %v213_v6 = vld [vmem:[#allocation8 + $0x10] sm:$0xff]  ;;  %v382_v7 = vpack.c.bf16 %v77_v4, %v75_v2  ;;  %v74_v9 = vld [vmem:[#allocation7] sm:$0xff]  ;;  %v216_v11 = vld [vmem:[#allocation8 + $0x28] sm:$0xff]  ;;  %s605_s17 = scalar_lea.vmem %s369_s16, 512  ;;  %p610_p5 = scmp.lt.s32.totalorder %s369_s16, %s369_s16 }
  0x4c   :  { %v448_v8 = vpack.c.bf16 %v213_v6, %v211_v5  ;;  %v76_v10 = vld [vmem:[#allocation7 + $0x10] sm:$0xff]  ;;  %447 = vmatprep.subr.bf16.mxu1 %v446_v3  ;;  %v218_v13 = vld [vmem:[#allocation8 + $0x38] sm:$0xff]  ;;  %v79_v14 = vld [vmem:[#allocation7 + $0x28] sm:$0xff]  ;;  %p606_p4 = scmp.ne.s32.totalorder %s369_s16, %s605_s17  ;;  %p611_p6 = scmp.lt.s32.totalorder %s605_s17, %s605_s17 }
  0x4d   :  { %v384_v12 = vpack.c.bf16 %v76_v10, %v74_v9  ;;  %v81_v15 = vld [vmem:[#allocation7 + $0x38] sm:$0xff]  ;;  %383 = vmatprep.subr.bf16.mxu0 %v382_v7  ;;  %v450_v16 = vpack.c.bf16 %v218_v13, %v216_v11  ;;  %v215_v18 = vld [vmem:[#allocation8 + $0x20] sm:$0xff]  ;;  %v217_v19 = vld [vmem:[#allocation8 + $0x30] sm:$0xff] }
  0x4e   :  { %449 = vmatpush1.bf16.msra.mxu1 %v448_v8  ;;  %v386_v17 = vpack.c.bf16 %v81_v15, %v79_v14  ;;  %v78_v20 = vld [vmem:[#allocation7 + $0x20] sm:$0xff]  ;;  %v452_v21 = vpack.c.bf16 %v217_v19, %v215_v18  ;;  %v80_v22 = vld [vmem:[#allocation7 + $0x30] sm:$0xff]  ;;  %v220_v23 = vld [vmem:[#allocation8 + $0x48] sm:$0xff]  ;;  %p612_p7 = por %p611_p6, %p610_p5 }
  0x4f   :  { %385 = vmatpush1.bf16.msra.mxu0 %v384_v12  ;;  %v222_v24 = vld [vmem:[#allocation8 + $0x58] sm:$0xff]  ;;  %451 = vmatprep.subr.bf16.mxu1 %v450_v16  ;;  %v388_v25 = vpack.c.bf16 %v80_v22, %v78_v20  ;;  %v83_v27 = vld [vmem:[#allocation7 + $0x48] sm:$0xff]  ;;  %v219_v29 = vld [vmem:[#allocation8 + $0x40] sm:$0xff] }
  0x50   :  { %387 = vmatprep.subr.bf16.mxu0 %v386_v17  ;;  %v454_v26 = vpack.c.bf16 %v222_v24, %v220_v23  ;;  %v85_v28 = vld [vmem:[#allocation7 + $0x58] sm:$0xff]  ;;  %v221_v31 = vld [vmem:[#allocation8 + $0x50] sm:$0xff]  ;;  %v82_v32 = vld [vmem:[#allocation7 + $0x40] sm:$0xff]  ;;  %p613_p8 = pnand %p612_p7, %p606_p4 }
  0x51   :  { %v390_v30 = vpack.c.bf16 %v85_v28, %v83_v27  ;;  %v84_v33 = vld [vmem:[#allocation7 + $0x50] sm:$0xff]  ;;  %v456_v34 = vpack.c.bf16 %v221_v31, %v219_v29  ;;  %v224_v35 = vld [vmem:[#allocation8 + $0x68] sm:$0xff]  ;;  %v226_v36 = vld [vmem:[#allocation8 + $0x78] sm:$0xff] }
  0x52   :  { %453 = vmatpush1.bf16.msra.mxu1 %v452_v21  ;;  %v87_v37 = vld [vmem:[#allocation7 + $0x68] sm:$0xff]  ;;  %v392_v38 = vpack.c.bf16 %v84_v33, %v82_v32  ;;  %v458_v39 = vpack.c.bf16 %v226_v36, %v224_v35  ;;  %v89_v40 = vld [vmem:[#allocation7 + $0x78] sm:$0xff]  ;;  %v223_v41 = vld [vmem:[#allocation8 + $0x60] sm:$0xff] }
  0x53   :  { %389 = vmatpush1.bf16.msra.mxu0 %v388_v25  ;;  %455 = vmatprep.subr.bf16.mxu1 %v454_v26  ;;  %v225_v42 = vld [vmem:[#allocation8 + $0x70] sm:$0xff]  ;;  %v394_v43 = vpack.c.bf16 %v89_v40, %v87_v37  ;;  %v86_v44 = vld [vmem:[#allocation7 + $0x60] sm:$0xff]  ;;  %v228_v46 = vld [vmem:[#allocation8 + $0x88] sm:$0xff] }
  0x54   :  { %391 = vmatprep.subr.bf16.mxu0 %v390_v30  ;;  %v88_v45 = vld [vmem:[#allocation7 + $0x70] sm:$0xff]  ;;  %v230_v47 = vld [vmem:[#allocation8 + $0x98] sm:$0xff]  ;;  %v91_v48 = vld [vmem:[#allocation7 + $0x88] sm:$0xff]  ;;  %v460_v50 = vpack.c.bf16 %v225_v42, %v223_v41 }
  0x55   :  { %v93_v49 = vld [vmem:[#allocation7 + $0x98] sm:$0xff]  ;;  %v396_v51 = vpack.c.bf16 %v88_v45, %v86_v44  ;;  %v462_v52 = vpack.c.bf16 %v230_v47, %v228_v46  ;;  %v227_v53 = vld [vmem:[#allocation8 + $0x80] sm:$0xff]  ;;  %v229_v54 = vld [vmem:[#allocation8 + $0x90] sm:$0xff] }
  0x56   :  { %457 = vmatpush1.bf16.msra.mxu1 %v456_v34  ;;  %v90_v55 = vld [vmem:[#allocation7 + $0x80] sm:$0xff]  ;;  %v398_v56 = vpack.c.bf16 %v93_v49, %v91_v48  ;;  %v92_v57 = vld [vmem:[#allocation7 + $0x90] sm:$0xff]  ;;  %v232_v58 = vld [vmem:[#allocation8 + $0xa8] sm:$0xff]  ;;  %v464_v62 = vpack.c.bf16 %v229_v54, %v227_v53 }
  0x57   :  { %393 = vmatpush1.bf16.msra.mxu0 %v392_v38  ;;  %459 = vmatprep.subr.bf16.mxu1 %v458_v39  ;;  %v234_v59 = vld [vmem:[#allocation8 + $0xb8] sm:$0xff]  ;;  %v95_v60 = vld [vmem:[#allocation7 + $0xa8] sm:$0xff]  ;;  %v400_v63 = vpack.c.bf16 %v92_v57, %v90_v55  ;;  %v231_v1 = vld [vmem:[#allocation8 + $0xa0] sm:$0xff] }
  0x58   :  { %395 = vmatprep.subr.bf16.mxu0 %v394_v43  ;;  %v97_v61 = vld [vmem:[#allocation7 + $0xb8] sm:$0xff]  ;;  %v466_v0 = vpack.c.bf16 %v234_v59, %v232_v58  ;;  %v233_v2 = vld [vmem:[#allocation8 + $0xb0] sm:$0xff]  ;;  %v94_v3 = vld [vmem:[#allocation7 + $0xa0] sm:$0xff] }
  0x59   :  { %v402_v4 = vpack.c.bf16 %v97_v61, %v95_v60  ;;  %v96_v5 = vld [vmem:[#allocation7 + $0xb0] sm:$0xff]  ;;  %v236_v6 = vld [vmem:[#allocation8 + $0xc8] sm:$0xff]  ;;  %v238_v7 = vld [vmem:[#allocation8 + $0xd8] sm:$0xff]  ;;  %v468_v10 = vpack.c.bf16 %v233_v2, %v231_v1 }
  0x5a   :  { %461 = vmatpush1.bf16.msra.mxu1 %v460_v50  ;;  %v99_v8 = vld [vmem:[#allocation7 + $0xc8] sm:$0xff]  ;;  %v101_v9 = vld [vmem:[#allocation7 + $0xd8] sm:$0xff]  ;;  %v404_v11 = vpack.c.bf16 %v96_v5, %v94_v3  ;;  %v470_v12 = vpack.c.bf16 %v238_v7, %v236_v6  ;;  %v235_v13 = vld [vmem:[#allocation8 + $0xc0] sm:$0xff] }
  0x5b   :  { %397 = vmatpush1.bf16.msra.mxu0 %v396_v51  ;;  %463 = vmatprep.subr.bf16.mxu1 %v462_v52  ;;  %v237_v14 = vld [vmem:[#allocation8 + $0xd0] sm:$0xff]  ;;  %v98_v15 = vld [vmem:[#allocation7 + $0xc0] sm:$0xff]  ;;  %v406_v16 = vpack.c.bf16 %v101_v9, %v99_v8  ;;  %v240_v18 = vld [vmem:[#allocation8 + $0xe8] sm:$0xff] }
  0x5c   :  { %399 = vmatprep.subr.bf16.mxu0 %v398_v56  ;;  %v100_v17 = vld [vmem:[#allocation7 + $0xd0] sm:$0xff]  ;;  %v242_v19 = vld [vmem:[#allocation8 + $0xf8] sm:$0xff]  ;;  %v103_v20 = vld [vmem:[#allocation7 + $0xe8] sm:$0xff]  ;;  %v472_v22 = vpack.c.bf16 %v237_v14, %v235_v13 }
  0x5d   :  { %v105_v21 = vld [vmem:[#allocation7 + $0xf8] sm:$0xff]  ;;  %v408_v23 = vpack.c.bf16 %v100_v17, %v98_v15  ;;  %v474_v24 = vpack.c.bf16 %v242_v19, %v240_v18  ;;  %v239_v25 = vld [vmem:[#allocation8 + $0xe0] sm:$0xff]  ;;  %v241_v26 = vld [vmem:[#allocation8 + $0xf0] sm:$0xff] }
  0x5e   :  { %465 = vmatpush1.bf16.msra.mxu1 %v464_v62  ;;  %v102_v27 = vld [vmem:[#allocation7 + $0xe0] sm:$0xff]  ;;  %v410_v28 = vpack.c.bf16 %v105_v21, %v103_v20  ;;  %v104_v29 = vld [vmem:[#allocation7 + $0xf0] sm:$0xff]  ;;  %v244_v30 = vld [vmem:[#allocation8 + $0x108] sm:$0xff]  ;;  %v476_v34 = vpack.c.bf16 %v241_v26, %v239_v25 }
  0x5f   :  { %401 = vmatpush1.bf16.msra.mxu0 %v400_v63  ;;  %467 = vmatprep.subr.bf16.mxu1 %v466_v0  ;;  %v246_v31 = vld [vmem:[#allocation8 + $0x118] sm:$0xff]  ;;  %v107_v32 = vld [vmem:[#allocation7 + $0x108] sm:$0xff]  ;;  %v412_v35 = vpack.c.bf16 %v104_v29, %v102_v27  ;;  %v243_v37 = vld [vmem:[#allocation8 + $0x100] sm:$0xff] }
  0x60   :  { %403 = vmatprep.subr.bf16.mxu0 %v402_v4  ;;  %v109_v33 = vld [vmem:[#allocation7 + $0x118] sm:$0xff]  ;;  %v478_v36 = vpack.c.bf16 %v246_v31, %v244_v30  ;;  %v245_v38 = vld [vmem:[#allocation8 + $0x110] sm:$0xff]  ;;  %v106_v39 = vld [vmem:[#allocation7 + $0x100] sm:$0xff] }
  0x61   :  { %v414_v40 = vpack.c.bf16 %v109_v33, %v107_v32  ;;  %v108_v41 = vld [vmem:[#allocation7 + $0x110] sm:$0xff]  ;;  %v248_v42 = vld [vmem:[#allocation8 + $0x128] sm:$0xff]  ;;  %v250_v43 = vld [vmem:[#allocation8 + $0x138] sm:$0xff]  ;;  %v480_v46 = vpack.c.bf16 %v245_v38, %v243_v37 }
  0x62   :  { %469 = vmatpush1.bf16.msra.mxu1 %v468_v10  ;;  %v111_v44 = vld [vmem:[#allocation7 + $0x128] sm:$0xff]  ;;  %v113_v45 = vld [vmem:[#allocation7 + $0x138] sm:$0xff]  ;;  %v416_v47 = vpack.c.bf16 %v108_v41, %v106_v39  ;;  %v482_v48 = vpack.c.bf16 %v250_v43, %v248_v42  ;;  %v247_v49 = vld [vmem:[#allocation8 + $0x120] sm:$0xff] }
  0x63   :  { %405 = vmatpush1.bf16.msra.mxu0 %v404_v11  ;;  %471 = vmatprep.subr.bf16.mxu1 %v470_v12  ;;  %v249_v50 = vld [vmem:[#allocation8 + $0x130] sm:$0xff]  ;;  %v110_v51 = vld [vmem:[#allocation7 + $0x120] sm:$0xff]  ;;  %v418_v52 = vpack.c.bf16 %v113_v45, %v111_v44  ;;  %v252_v54 = vld [vmem:[#allocation8 + $0x148] sm:$0xff] }
  0x64   :  { %407 = vmatprep.subr.bf16.mxu0 %v406_v16  ;;  %v112_v53 = vld [vmem:[#allocation7 + $0x130] sm:$0xff]  ;;  %v254_v55 = vld [vmem:[#allocation8 + $0x158] sm:$0xff]  ;;  %v115_v56 = vld [vmem:[#allocation7 + $0x148] sm:$0xff]  ;;  %v484_v58 = vpack.c.bf16 %v249_v50, %v247_v49 }
  0x65   :  { %v117_v57 = vld [vmem:[#allocation7 + $0x158] sm:$0xff]  ;;  %v420_v59 = vpack.c.bf16 %v112_v53, %v110_v51  ;;  %v486_v60 = vpack.c.bf16 %v254_v55, %v252_v54  ;;  %v251_v61 = vld [vmem:[#allocation8 + $0x140] sm:$0xff]  ;;  %v253_v62 = vld [vmem:[#allocation8 + $0x150] sm:$0xff] }
  0x66   :  { %473 = vmatpush1.bf16.msra.mxu1 %v472_v22  ;;  %v114_v63 = vld [vmem:[#allocation7 + $0x140] sm:$0xff]  ;;  %v422_v0 = vpack.c.bf16 %v117_v57, %v115_v56  ;;  %v116_v1 = vld [vmem:[#allocation7 + $0x150] sm:$0xff]  ;;  %v256_v2 = vld [vmem:[#allocation8 + $0x168] sm:$0xff]  ;;  %v488_v6 = vpack.c.bf16 %v253_v62, %v251_v61 }
  0x67   :  { %409 = vmatpush1.bf16.msra.mxu0 %v408_v23  ;;  %475 = vmatprep.subr.bf16.mxu1 %v474_v24  ;;  %v258_v3 = vld [vmem:[#allocation8 + $0x178] sm:$0xff]  ;;  %v119_v4 = vld [vmem:[#allocation7 + $0x168] sm:$0xff]  ;;  %v255_v7 = vld [vmem:[#allocation8 + $0x160] sm:$0xff]  ;;  %v424_v8 = vpack.c.bf16 %v116_v1, %v114_v63 }
  0x68   :  { %411 = vmatprep.subr.bf16.mxu0 %v410_v28  ;;  %v121_v5 = vld [vmem:[#allocation7 + $0x178] sm:$0xff]  ;;  %v490_v9 = vpack.c.bf16 %v258_v3, %v256_v2  ;;  %v257_v10 = vld [vmem:[#allocation8 + $0x170] sm:$0xff]  ;;  %v118_v11 = vld [vmem:[#allocation7 + $0x160] sm:$0xff] }
  0x69   :  { %v120_v12 = vld [vmem:[#allocation7 + $0x170] sm:$0xff]  ;;  %v426_v13 = vpack.c.bf16 %v121_v5, %v119_v4  ;;  %v260_v14 = vld [vmem:[#allocation8 + $0x188] sm:$0xff]  ;;  %v262_v15 = vld [vmem:[#allocation8 + $0x198] sm:$0xff]  ;;  %v492_v20 = vpack.c.bf16 %v257_v10, %v255_v7  ;;  %v277_v4 = vlaneseq }
  0x6a   :  { %477 = vmatpush1.bf16.msra.mxu1 %v476_v34  ;;  %v210_v16 = vld [vmem:[#allocation5 + $0x8] sm:$0xff]  ;;  %v123_v17 = vld [vmem:[#allocation7 + $0x188] sm:$0xff]  ;;  %v428_v21 = vpack.c.bf16 %v120_v12, %v118_v11  ;;  %v494_v22 = vpack.c.bf16 %v262_v15, %v260_v14  ;;  %v259_v23 = vld [vmem:[#allocation8 + $0x180] sm:$0xff] }
  0x6b   :  { %413 = vmatpush1.bf16.msra.mxu0 %v412_v35  ;;  %479 = vmatprep.subr.bf16.mxu1 %v478_v36  ;;  %v125_v18 = vld [vmem:[#allocation7 + $0x198] sm:$0xff]  ;;  %v73_v19 = vld [vmem:[#allocation2 + $0x8] sm:$0xff]  ;;  %v261_v24 = vld [vmem:[#allocation8 + $0x190] sm:$0xff]  ;;  %v278_v5 = vshrl.u32 %v277_v4, 7 }
  0x6c   :  { %415 = vmatprep.subr.bf16.mxu0 %v414_v40  ;;  %351 = vmatprep.mubr.f32.mxu1 %v210_v16  ;;  %v122_v25 = vld [vmem:[#allocation7 + $0x180] sm:$0xff]  ;;  %v430_v26 = vpack.c.bf16 %v125_v18, %v123_v17  ;;  %v124_v27 = vld [vmem:[#allocation7 + $0x190] sm:$0xff]  ;;  %v264_v28 = vld [vmem:[#allocation8 + $0x1a8] sm:$0xff]  ;;  %v496_v32 = vpack.c.bf16 %v261_v24, %v259_v23 }
  0x6d   :  { %202 = vmatprep.mubr.f32.mxu0 %v73_v19  ;;  %v266_v29 = vld [vmem:[#allocation8 + $0x1b8] sm:$0xff]  ;;  %v127_v30 = vld [vmem:[#allocation7 + $0x1a8] sm:$0xff]  ;;  %v432_v33 = vpack.c.bf16 %v124_v27, %v122_v25  ;;  %v263_v35 = vld [vmem:[#allocation8 + $0x1a0] sm:$0xff] }
  0x6e   :  { %481 = vmatpush1.bf16.msra.mxu1 %v480_v46  ;;  %v129_v31 = vld [vmem:[#allocation7 + $0x1b8] sm:$0xff]  ;;  %v498_v34 = vpack.c.bf16 %v266_v29, %v264_v28  ;;  %v265_v36 = vld [vmem:[#allocation8 + $0x1b0] sm:$0xff]  ;;  %v126_v37 = vld [vmem:[#allocation7 + $0x1a0] sm:$0xff] }
  0x6f   :  { %417 = vmatpush1.bf16.msra.mxu0 %v416_v47  ;;  %483 = vmatprep.subr.bf16.mxu1 %v482_v48  ;;  %v434_v38 = vpack.c.bf16 %v129_v31, %v127_v30  ;;  %v128_v39 = vld [vmem:[#allocation7 + $0x1b0] sm:$0xff]  ;;  %v268_v40 = vld [vmem:[#allocation8 + $0x1c8] sm:$0xff]  ;;  %v270_v41 = vld [vmem:[#allocation8 + $0x1d8] sm:$0xff]  ;;  %v500_v44 = vpack.c.bf16 %v265_v36, %v263_v35 }
  0x70   :  { %419 = vmatprep.subr.bf16.mxu0 %v418_v52  ;;  %v131_v42 = vld [vmem:[#allocation7 + $0x1c8] sm:$0xff]  ;;  %v133_v43 = vld [vmem:[#allocation7 + $0x1d8] sm:$0xff]  ;;  %v436_v45 = vpack.c.bf16 %v128_v39, %v126_v37  ;;  %v502_v46 = vpack.c.bf16 %v270_v41, %v268_v40  ;;  %v267_v47 = vld [vmem:[#allocation8 + $0x1c0] sm:$0xff] }
  0x71   :  { %v269_v48 = vld [vmem:[#allocation8 + $0x1d0] sm:$0xff]  ;;  %v130_v49 = vld [vmem:[#allocation7 + $0x1c0] sm:$0xff]  ;;  %v438_v50 = vpack.c.bf16 %v133_v43, %v131_v42  ;;  %v272_v52 = vld [vmem:[#allocation8 + $0x1e8] sm:$0xff] }
  0x72   :  { %485 = vmatpush1.bf16.msra.mxu1 %v484_v58  ;;  %v132_v51 = vld [vmem:[#allocation7 + $0x1d0] sm:$0xff]  ;;  %v274_v53 = vld [vmem:[#allocation8 + $0x1f8] sm:$0xff]  ;;  %v135_v54 = vld [vmem:[#allocation7 + $0x1e8] sm:$0xff]  ;;  %v504_v56 = vpack.c.bf16 %v269_v48, %v267_v47 }
  0x73   :  { %421 = vmatpush1.bf16.msra.mxu0 %v420_v59  ;;  %487 = vmatprep.subr.bf16.mxu1 %v486_v60  ;;  %v137_v55 = vld [vmem:[#allocation7 + $0x1f8] sm:$0xff]  ;;  %v440_v57 = vpack.c.bf16 %v132_v51, %v130_v49  ;;  %v506_v58 = vpack.c.bf16 %v274_v53, %v272_v52  ;;  %v271_v59 = vld [vmem:[#allocation8 + $0x1e0] sm:$0xff]  ;;  %v273_v60 = vld [vmem:[#allocation8 + $0x1f0] sm:$0xff] }
  0x74   :  { %423 = vmatprep.subr.bf16.mxu0 %v422_v0  ;;  %v442_v61 = vpack.c.bf16 %v137_v55, %v135_v54  ;;  %v134_v62 = vld [vmem:[#allocation7 + $0x1e0] sm:$0xff]  ;;  %v136_v63 = vld [vmem:[#allocation7 + $0x1f0] sm:$0xff]  ;;  %v508_v0 = vpack.c.bf16 %v273_v60, %v271_v59 }
  0x75   :  { %v444_v1 = vpack.c.bf16 %v136_v63, %v134_v62  ;;  %v209_v2 = vld [vmem:[#allocation5] sm:$0xff]  ;;  %v72_v3 = vld [vmem:[#allocation2] sm:$0xff] }
  0x76   :  { %489 = vmatpush1.bf16.msra.mxu1 %v488_v6  ;;  %v279_v6 = vsub.s32 0, %v278_v5  ;;  %v275_v7 = vld [vmem:[%s748_s4] sm:$0x3] }
  0x77   :  { %425 = vmatpush1.bf16.msra.mxu0 %v424_v8  ;;  %491 = vmatprep.subr.bf16.mxu1 %v490_v9  ;;  %v283_v8 = vsub.s32 1, %v278_v5 }
  0x78   :  { %427 = vmatprep.subr.bf16.mxu0 %v426_v13  ;;  %v280_v9 = vrot.slane %v275_v7, %v279_v6 }
  0x79   :  { %v284_v10 = vrot.slane %v275_v7, %v283_v8 }
  0x7a   :  { %493 = vmatpush1.bf16.msra.mxu1 %v492_v20 }
  0x7b   :  { %429 = vmatpush1.bf16.msra.mxu0 %v428_v21  ;;  %495 = vmatprep.subr.bf16.mxu1 %v494_v22 }
  0x7c   :  { %431 = vmatprep.subr.bf16.mxu0 %v430_v26 }
  0x7e   :  { %497 = vmatpush1.bf16.msra.mxu1 %v496_v32 }
  0x7f   :  { %433 = vmatpush1.bf16.msra.mxu0 %v432_v33  ;;  %499 = vmatprep.subr.bf16.mxu1 %v498_v34 }
  0x80   :  { %435 = vmatprep.subr.bf16.mxu0 %v434_v38 }
  0x82   :  { %501 = vmatpush1.bf16.msra.mxu1 %v500_v44 }
  0x83   :  { %437 = vmatpush1.bf16.msra.mxu0 %v436_v45  ;;  %503 = vmatprep.subr.bf16.mxu1 %v502_v46 }
  0x84   :  { %439 = vmatprep.subr.bf16.mxu0 %v438_v50 }
  0x86   :  { %505 = vmatpush1.bf16.msra.mxu1 %v504_v56 }
  0x87   :  { %441 = vmatpush1.bf16.msra.mxu0 %v440_v57  ;;  %507 = vmatprep.subr.bf16.mxu1 %v506_v58 }
  0x88   :  { %443 = vmatprep.subr.bf16.mxu0 %v442_v61 }
  0x8a   :  { %509 = vmatpush1.bf16.msra.mxu1 %v508_v0 }
  0x8b   :  { %445 = vmatpush1.bf16.msra.mxu0 %v444_v1 }
  0x8d   :  { %352 = vmatmul.mubr.f32.vlgmr.msra.gmra.mrb[0].mxu1 %v209_v2 }
  0x8e   :  { %203 = vmatmul.mubr.f32.vlgmr.msra.gmra.mrb[0].mxu0 %v72_v3 }
 0x160   :  { %v353_v11 = vpop.f32.mrb[0].mxu1 }
 0x161   :  { %v354_v12 = vadd.f32 %v353_v11, %v280_v9  ;;  %v204_v13 = vpop.f32.mrb[0].mxu0  ;;  %v355_v14 = vpop.f32.mrb[1].mxu1 }
 0x162   :  { %358 = vst [vmem:[#allocation10] sm:$0xff] %v204_v13  ;;  %v356_v15 = vadd.f32 %v355_v14, %v284_v10  ;;  %v206_v16 = vpop.f32.mrb[1].mxu0 }
 0x163   :  { %361 = vst [vmem:[#allocation10 + $0x10] sm:$0xff] %v354_v12  ;;  %359 = vst [vmem:[#allocation10 + $0x8] sm:$0xff] %v206_v16 }
 0x164   :  { %362 = vst [vmem:[#allocation10 + $0x18] sm:$0xff] %v356_v15 }
 0x165   :  { %616 = shalt.err (!%p613_p8)
}
 0x166   :  { %s617_s19 = scalar_lea.hbm %s749_s5, 512 }
 0x167   :  { %p618_p9 = scmp.ne.s32.totalorder %s749_s5, %s617_s19  ;;  %p621_p10 = scmp.lt.u32.totalorder %s617_s19, %s749_s5 }
 0x169   :  { %p623_p11 = pnand %p621_p10, %p618_p9 }
 0x16b   :  { %626 = shalt.err (!%p623_p11)
}
 0x16c   :  { %374 = dma.vmem_to_hbm [thread:$0]  %s369_s16, 512, %s749_s5, [#allocation4], %s638_s0, %s638_s0, %s639_s21  }
 0x16d   :  { %633 = dma.done.wait [#allocation4], 512  }
 0x16e   :  { %634 = vsyncadd [#allocation4], 4294966784 }
 0x16f   :  { %378 = vsyncpa [#allocation3], 1 }
 0x170   :  { %379 = vsyncpa [#allocation6], 1 }
 0x171   :  { %380 = vsyncpa [#allocation9], 1 }
 0x172   :  { %381 = vsyncpa [#allocation4], 1 }

// kernel: tpu_custom_call.1
= control target key start
LH: loop header
LB: loop body
LE: loop exit
PB: predicated region body
PF: predicated region fallthrough
CT: control target
= control target key end

     0   :  { %10 = vsyncpa [#allocation3], 0  ;;  %s744_s0 = inlined_call_operand.hbm [shape: f32[8,256], index: 0, kind: input, shape index: {}]   ;;  %s745_s1 = inlined_call_operand.hbm [shape: f32[8,256], index: 1, kind: input, shape index: {}]   ;;  %s746_s2 = inlined_call_operand.hbm [shape: f32[256,256], index: 2, kind: input, shape index: {}]   ;;  %s747_s3 = inlined_call_operand.hbm [shape: f32[256,256], index: 3, kind: input, shape index: {}]   ;;  %s748_s4 = inlined_call_operand.vmem [shape: f32[1,256], index: 4, kind: input, shape index: {}]   ;;  %s749_s5 = inlined_call_operand.hbm [shape: f32[2,8,256], index: 5, kind: output, shape index: {}]  }
   0x1   :  { %11 = vsyncpa [#allocation6], 0 }
   0x2   :  { %12 = vsyncpa [#allocation9], 0 }
   0x3   :  { %13 = vsyncpa [#allocation4], 0  ;;  %s635_s18 = smov [#allocation5]   ;;  %s636_s20 = smov [#allocation2]  }
   0x4   :  { %s30_s19 = sshll.u32 %s635_s18, 4  ;;  %s20_s21 = sshll.u32 %s636_s20, 4  ;;  %s31_s19 = int_to_ptr.vmem [resolvable:$true] %s30_s19  ;;  %s21_s21 = int_to_ptr.vmem [resolvable:$true] %s20_s21 }
   0x5   :  { %s517_s24 = scalar_lea.hbm %s745_s1, 256 }
   0x6   :  { %p518_p0 = scmp.ne.s32.totalorder %s745_s1, %s517_s24  ;;  %p521_p1 = scmp.lt.u32.totalorder %s517_s24, %s745_s1 }
   0x8   :  { %p523_p2 = pnand %p521_p1, %p518_p0 }
   0xa   :  { %526 = shalt.err (!%p523_p2)
}
   0xb   :  { %s527_s29 = scalar_lea.vmem %s31_s19, 256  ;;  %p532_p4 = scmp.lt.s32.totalorder %s31_s19, %s31_s19 }
   0xc   :  { %p528_p3 = scmp.ne.s32.totalorder %s31_s19, %s527_s29  ;;  %p533_p5 = scmp.lt.s32.totalorder %s527_s29, %s527_s29 }
   0xe   :  { %p534_p6 = por %p533_p5, %p532_p4 }
  0x10   :  { %p535_p7 = pnand %p534_p6, %p528_p3 }
  0x12   :  { %538 = shalt.err (!%p535_p7)
}
  0x13   :  { %33 = dma.hbm_to_vmem [thread:$0]  %s745_s1, 256, %s31_s19, [#allocation6]  }
  0x14   :  { %s539_s9 = scalar_lea.hbm %s744_s0, 256 }
  0x15   :  { %p540_p8 = scmp.ne.s32.totalorder %s744_s0, %s539_s9  ;;  %p543_p9 = scmp.lt.u32.totalorder %s539_s9, %s744_s0 }
  0x17   :  { %p545_p10 = pnand %p543_p9, %p540_p8 }
  0x19   :  { %548 = shalt.err (!%p545_p10)
}
  0x1a   :  { %s549_s14 = scalar_lea.vmem %s21_s21, 256  ;;  %p554_p12 = scmp.lt.s32.totalorder %s21_s21, %s21_s21 }
  0x1b   :  { %p550_p11 = scmp.ne.s32.totalorder %s21_s21, %s549_s14  ;;  %p555_p13 = scmp.lt.s32.totalorder %s549_s14, %s549_s14 }
  0x1d   :  { %p556_p0 = por %p555_p13, %p554_p12 }
  0x1f   :  { %p557_p1 = pnand %p556_p0, %p550_p11 }
  0x21   :  { %560 = shalt.err (!%p557_p1)
}
  0x22   :  { %23 = dma.hbm_to_vmem [thread:$0]  %s744_s0, 256, %s21_s21, [#allocation3]  }
  0x23   :  { %s637_s16 = smov [#allocation7]   ;;  %s561_s20 = scalar_lea.hbm %s746_s2, 8192 }
  0x24   :  { %s39_s17 = sshll.u32 %s637_s16, 4  ;;  %p562_p2 = scmp.ne.s32.totalorder %s746_s2, %s561_s20  ;;  %s40_s17 = int_to_ptr.vmem [resolvable:$true] %s39_s17 }
  0x25   :  { %p565_p3 = scmp.lt.u32.totalorder %s561_s20, %s746_s2 }
  0x27   :  { %p567_p4 = pnand %p565_p3, %p562_p2 }
  0x29   :  { %570 = shalt.err (!%p567_p4)
}
  0x2a   :  { %s571_s26 = scalar_lea.vmem %s40_s17, 8192  ;;  %p576_p6 = scmp.lt.s32.totalorder %s40_s17, %s40_s17 }
  0x2b   :  { %p572_p5 = scmp.ne.s32.totalorder %s40_s17, %s571_s26  ;;  %p577_p7 = scmp.lt.s32.totalorder %s571_s26, %s571_s26 }
  0x2d   :  { %p578_p8 = por %p577_p7, %p576_p6 }
  0x2f   :  { %p579_p9 = pnand %p578_p8, %p572_p5 }
  0x31   :  { %582 = shalt.err (!%p579_p9)
}
  0x32   :  { %s638_s0 = smov 256   ;;  %s639_s21 = smov 16  }
  0x33   :  { %45 = dma.hbm_to_vmem [thread:$0]  %s746_s2, 8192, %s40_s17, [#allocation6], %s638_s0, %s638_s0, %s639_s21  }
  0x34   :  { %s640_s29 = smov [#allocation8]   ;;  %s583_s8 = scalar_lea.hbm %s747_s3, 8192 }
  0x35   :  { %s51_s30 = sshll.u32 %s640_s29, 4  ;;  %p584_p10 = scmp.ne.s32.totalorder %s747_s3, %s583_s8  ;;  %s52_s30 = int_to_ptr.vmem [resolvable:$true] %s51_s30 }
  0x36   :  { %p587_p11 = scmp.lt.u32.totalorder %s583_s8, %s747_s3 }
  0x38   :  { %p589_p12 = pnand %p587_p11, %p584_p10 }
  0x3a   :  { %592 = shalt.err (!%p589_p12)
}
  0x3b   :  { %s593_s13 = scalar_lea.vmem %s52_s30, 8192  ;;  %p598_p0 = scmp.lt.s32.totalorder %s52_s30, %s52_s30 }
  0x3c   :  { %p594_p13 = scmp.ne.s32.totalorder %s52_s30, %s593_s13  ;;  %p599_p1 = scmp.lt.s32.totalorder %s593_s13, %s593_s13 }
  0x3e   :  { %p600_p2 = por %p599_p1, %p598_p0 }
  0x40   :  { %p601_p3 = pnand %p600_p2, %p594_p13 }
  0x42   :  { %604 = shalt.err (!%p601_p3)
}
  0x43   :  { %57 = dma.hbm_to_vmem [thread:$0]  %s747_s3, 8192, %s52_s30, [#allocation9], %s638_s0, %s638_s0, %s639_s21  }
  0x44   :  { %627 = dma.done.wait [#allocation3], 256  }
  0x45   :  { %628 = vsyncadd [#allocation3], 4294967040 }
  0x46   :  { %629 = dma.done.wait [#allocation6], 8448  }
  0x47   :  { %630 = vsyncadd [#allocation6], 4294958848 }
  0x48   :  { %631 = dma.done.wait [#allocation9], 8192  }
  0x49   :  { %632 = vsyncadd [#allocation9], 4294959104  ;;  %v212_v0 = vld [vmem:[#allocation8 + $0x8] sm:$0xff]  ;;  %v214_v1 = vld [vmem:[#allocation8 + $0x18] sm:$0xff]  ;;  %s641_s15 = smov [#allocation10]  }
  0x4a   :  { %v75_v2 = vld [vmem:[#allocation7 + $0x8] sm:$0xff]  ;;  %v446_v3 = vpack.c.bf16 %v214_v1, %v212_v0  ;;  %v77_v4 = vld [vmem:[#allocation7 + $0x18] sm:$0xff]  ;;  %v211_v5 = vld [vmem:[#allocation8] sm:$0xff]  ;;  %s368_s16 = sshll.u32 %s641_s15, 4  ;;  %s369_s16 = int_to_ptr.vmem [resolvable:$true] %s368_s16 }
  0x4b   :  { %v213_v6 = vld [vmem:[#allocation8 + $0x10] sm:$0xff]  ;;  %v382_v7 = vpack.c.bf16 %v77_v4, %v75_v2  ;;  %v74_v9 = vld [vmem:[#allocation7] sm:$0xff]  ;;  %v216_v11 = vld [vmem:[#allocation8 + $0x28] sm:$0xff]  ;;  %s605_s17 = scalar_lea.vmem %s369_s16, 512  ;;  %p610_p5 = scmp.lt.s32.totalorder %s369_s16, %s369_s16 }
  0x4c   :  { %v448_v8 = vpack.c.bf16 %v213_v6, %v211_v5  ;;  %v76_v10 = vld [vmem:[#allocation7 + $0x10] sm:$0xff]  ;;  %447 = vmatprep.subr.bf16.mxu1 %v446_v3  ;;  %v218_v13 = vld [vmem:[#allocation8 + $0x38] sm:$0xff]  ;;  %v79_v14 = vld [vmem:[#allocation7 + $0x28] sm:$0xff]  ;;  %p606_p4 = scmp.ne.s32.totalorder %s369_s16, %s605_s17  ;;  %p611_p6 = scmp.lt.s32.totalorder %s605_s17, %s605_s17 }
  0x4d   :  { %v384_v12 = vpack.c.bf16 %v76_v10, %v74_v9  ;;  %v81_v15 = vld [vmem:[#allocation7 + $0x38] sm:$0xff]  ;;  %383 = vmatprep.subr.bf16.mxu0 %v382_v7  ;;  %v450_v16 = vpack.c.bf16 %v218_v13, %v216_v11  ;;  %v215_v18 = vld [vmem:[#allocation8 + $0x20] sm:$0xff]  ;;  %v217_v19 = vld [vmem:[#allocation8 + $0x30] sm:$0xff] }
  0x4e   :  { %449 = vmatpush1.bf16.msra.mxu1 %v448_v8  ;;  %v386_v17 = vpack.c.bf16 %v81_v15, %v79_v14  ;;  %v78_v20 = vld [vmem:[#allocation7 + $0x20] sm:$0xff]  ;;  %v452_v21 = vpack.c.bf16 %v217_v19, %v215_v18  ;;  %v80_v22 = vld [vmem:[#allocation7 + $0x30] sm:$0xff]  ;;  %v220_v23 = vld [vmem:[#allocation8 + $0x48] sm:$0xff]  ;;  %p612_p7 = por %p611_p6, %p610_p5 }
  0x4f   :  { %385 = vmatpush1.bf16.msra.mxu0 %v384_v12  ;;  %v222_v24 = vld [vmem:[#allocation8 + $0x58] sm:$0xff]  ;;  %451 = vmatprep.subr.bf16.mxu1 %v450_v16  ;;  %v388_v25 = vpack.c.bf16 %v80_v22, %v78_v20  ;;  %v83_v27 = vld [vmem:[#allocation7 + $0x48] sm:$0xff]  ;;  %v219_v29 = vld [vmem:[#allocation8 + $0x40] sm:$0xff] }
  0x50   :  { %387 = vmatprep.subr.bf16.mxu0 %v386_v17  ;;  %v454_v26 = vpack.c.bf16 %v222_v24, %v220_v23  ;;  %v85_v28 = vld [vmem:[#allocation7 + $0x58] sm:$0xff]  ;;  %v221_v31 = vld [vmem:[#allocation8 + $0x50] sm:$0xff]  ;;  %v82_v32 = vld [vmem:[#allocation7 + $0x40] sm:$0xff]  ;;  %p613_p8 = pnand %p612_p7, %p606_p4 }
  0x51   :  { %v390_v30 = vpack.c.bf16 %v85_v28, %v83_v27  ;;  %v84_v33 = vld [vmem:[#allocation7 + $0x50] sm:$0xff]  ;;  %v456_v34 = vpack.c.bf16 %v221_v31, %v219_v29  ;;  %v224_v35 = vld [vmem:[#allocation8 + $0x68] sm:$0xff]  ;;  %v226_v36 = vld [vmem:[#allocation8 + $0x78] sm:$0xff] }
  0x52   :  { %453 = vmatpush1.bf16.msra.mxu1 %v452_v21  ;;  %v87_v37 = vld [vmem:[#allocation7 + $0x68] sm:$0xff]  ;;  %v392_v38 = vpack.c.bf16 %v84_v33, %v82_v32  ;;  %v458_v39 = vpack.c.bf16 %v226_v36, %v224_v35  ;;  %v89_v40 = vld [vmem:[#allocation7 + $0x78] sm:$0xff]  ;;  %v223_v41 = vld [vmem:[#allocation8 + $0x60] sm:$0xff] }
  0x53   :  { %389 = vmatpush1.bf16.msra.mxu0 %v388_v25  ;;  %455 = vmatprep.subr.bf16.mxu1 %v454_v26  ;;  %v225_v42 = vld [vmem:[#allocation8 + $0x70] sm:$0xff]  ;;  %v394_v43 = vpack.c.bf16 %v89_v40, %v87_v37  ;;  %v86_v44 = vld [vmem:[#allocation7 + $0x60] sm:$0xff]  ;;  %v228_v46 = vld [vmem:[#allocation8 + $0x88] sm:$0xff] }
  0x54   :  { %391 = vmatprep.subr.bf16.mxu0 %v390_v30  ;;  %v88_v45 = vld [vmem:[#allocation7 + $0x70] sm:$0xff]  ;;  %v230_v47 = vld [vmem:[#allocation8 + $0x98] sm:$0xff]  ;;  %v91_v48 = vld [vmem:[#allocation7 + $0x88] sm:$0xff]  ;;  %v460_v50 = vpack.c.bf16 %v225_v42, %v223_v41 }
  0x55   :  { %v93_v49 = vld [vmem:[#allocation7 + $0x98] sm:$0xff]  ;;  %v396_v51 = vpack.c.bf16 %v88_v45, %v86_v44  ;;  %v462_v52 = vpack.c.bf16 %v230_v47, %v228_v46  ;;  %v227_v53 = vld [vmem:[#allocation8 + $0x80] sm:$0xff]  ;;  %v229_v54 = vld [vmem:[#allocation8 + $0x90] sm:$0xff] }
  0x56   :  { %457 = vmatpush1.bf16.msra.mxu1 %v456_v34  ;;  %v90_v55 = vld [vmem:[#allocation7 + $0x80] sm:$0xff]  ;;  %v398_v56 = vpack.c.bf16 %v93_v49, %v91_v48  ;;  %v92_v57 = vld [vmem:[#allocation7 + $0x90] sm:$0xff]  ;;  %v232_v58 = vld [vmem:[#allocation8 + $0xa8] sm:$0xff]  ;;  %v464_v62 = vpack.c.bf16 %v229_v54, %v227_v53 }
  0x57   :  { %393 = vmatpush1.bf16.msra.mxu0 %v392_v38  ;;  %459 = vmatprep.subr.bf16.mxu1 %v458_v39  ;;  %v234_v59 = vld [vmem:[#allocation8 + $0xb8] sm:$0xff]  ;;  %v95_v60 = vld [vmem:[#allocation7 + $0xa8] sm:$0xff]  ;;  %v400_v63 = vpack.c.bf16 %v92_v57, %v90_v55  ;;  %v231_v1 = vld [vmem:[#allocation8 + $0xa0] sm:$0xff] }
  0x58   :  { %395 = vmatprep.subr.bf16.mxu0 %v394_v43  ;;  %v97_v61 = vld [vmem:[#allocation7 + $0xb8] sm:$0xff]  ;;  %v466_v0 = vpack.c.bf16 %v234_v59, %v232_v58  ;;  %v233_v2 = vld [vmem:[#allocation8 + $0xb0] sm:$0xff]  ;;  %v94_v3 = vld [vmem:[#allocation7 + $0xa0] sm:$0xff] }
  0x59   :  { %v402_v4 = vpack.c.bf16 %v97_v61, %v95_v60  ;;  %v96_v5 = vld [vmem:[#allocation7 + $0xb0] sm:$0xff]  ;;  %v236_v6 = vld [vmem:[#allocation8 + $0xc8] sm:$0xff]  ;;  %v238_v7 = vld [vmem:[#allocation8 + $0xd8] sm:$0xff]  ;;  %v468_v10 = vpack.c.bf16 %v233_v2, %v231_v1 }
  0x5a   :  { %461 = vmatpush1.bf16.msra.mxu1 %v460_v50  ;;  %v99_v8 = vld [vmem:[#allocation7 + $0xc8] sm:$0xff]  ;;  %v101_v9 = vld [vmem:[#allocation7 + $0xd8] sm:$0xff]  ;;  %v404_v11 = vpack.c.bf16 %v96_v5, %v94_v3  ;;  %v470_v12 = vpack.c.bf16 %v238_v7, %v236_v6  ;;  %v235_v13 = vld [vmem:[#allocation8 + $0xc0] sm:$0xff] }
  0x5b   :  { %397 = vmatpush1.bf16.msra.mxu0 %v396_v51  ;;  %463 = vmatprep.subr.bf16.mxu1 %v462_v52  ;;  %v237_v14 = vld [vmem:[#allocation8 + $0xd0] sm:$0xff]  ;;  %v98_v15 = vld [vmem:[#allocation7 + $0xc0] sm:$0xff]  ;;  %v406_v16 = vpack.c.bf16 %v101_v9, %v99_v8  ;;  %v240_v18 = vld [vmem:[#allocation8 + $0xe8] sm:$0xff] }
  0x5c   :  { %399 = vmatprep.subr.bf16.mxu0 %v398_v56  ;;  %v100_v17 = vld [vmem:[#allocation7 + $0xd0] sm:$0xff]  ;;  %v242_v19 = vld [vmem:[#allocation8 + $0xf8] sm:$0xff]  ;;  %v103_v20 = vld [vmem:[#allocation7 + $0xe8] sm:$0xff]  ;;  %v472_v22 = vpack.c.bf16 %v237_v14, %v235_v13 }
  0x5d   :  { %v105_v21 = vld [vmem:[#allocation7 + $0xf8] sm:$0xff]  ;;  %v408_v23 = vpack.c.bf16 %v100_v17, %v98_v15  ;;  %v474_v24 = vpack.c.bf16 %v242_v19, %v240_v18  ;;  %v239_v25 = vld [vmem:[#allocation8 + $0xe0] sm:$0xff]  ;;  %v241_v26 = vld [vmem:[#allocation8 + $0xf0] sm:$0xff] }
  0x5e   :  { %465 = vmatpush1.bf16.msra.mxu1 %v464_v62  ;;  %v102_v27 = vld [vmem:[#allocation7 + $0xe0] sm:$0xff]  ;;  %v410_v28 = vpack.c.bf16 %v105_v21, %v103_v20  ;;  %v104_v29 = vld [vmem:[#allocation7 + $0xf0] sm:$0xff]  ;;  %v244_v30 = vld [vmem:[#allocation8 + $0x108] sm:$0xff]  ;;  %v476_v34 = vpack.c.bf16 %v241_v26, %v239_v25 }
  0x5f   :  { %401 = vmatpush1.bf16.msra.mxu0 %v400_v63  ;;  %467 = vmatprep.subr.bf16.mxu1 %v466_v0  ;;  %v246_v31 = vld [vmem:[#allocation8 + $0x118] sm:$0xff]  ;;  %v107_v32 = vld [vmem:[#allocation7 + $0x108] sm:$0xff]  ;;  %v412_v35 = vpack.c.bf16 %v104_v29, %v102_v27  ;;  %v243_v37 = vld [vmem:[#allocation8 + $0x100] sm:$0xff] }
  0x60   :  { %403 = vmatprep.subr.bf16.mxu0 %v402_v4  ;;  %v109_v33 = vld [vmem:[#allocation7 + $0x118] sm:$0xff]  ;;  %v478_v36 = vpack.c.bf16 %v246_v31, %v244_v30  ;;  %v245_v38 = vld [vmem:[#allocation8 + $0x110] sm:$0xff]  ;;  %v106_v39 = vld [vmem:[#allocation7 + $0x100] sm:$0xff] }
  0x61   :  { %v414_v40 = vpack.c.bf16 %v109_v33, %v107_v32  ;;  %v108_v41 = vld [vmem:[#allocation7 + $0x110] sm:$0xff]  ;;  %v248_v42 = vld [vmem:[#allocation8 + $0x128] sm:$0xff]  ;;  %v250_v43 = vld [vmem:[#allocation8 + $0x138] sm:$0xff]  ;;  %v480_v46 = vpack.c.bf16 %v245_v38, %v243_v37 }
  0x62   :  { %469 = vmatpush1.bf16.msra.mxu1 %v468_v10  ;;  %v111_v44 = vld [vmem:[#allocation7 + $0x128] sm:$0xff]  ;;  %v113_v45 = vld [vmem:[#allocation7 + $0x138] sm:$0xff]  ;;  %v416_v47 = vpack.c.bf16 %v108_v41, %v106_v39  ;;  %v482_v48 = vpack.c.bf16 %v250_v43, %v248_v42  ;;  %v247_v49 = vld [vmem:[#allocation8 + $0x120] sm:$0xff] }
  0x63   :  { %405 = vmatpush1.bf16.msra.mxu0 %v404_v11  ;;  %471 = vmatprep.subr.bf16.mxu1 %v470_v12  ;;  %v249_v50 = vld [vmem:[#allocation8 + $0x130] sm:$0xff]  ;;  %v110_v51 = vld [vmem:[#allocation7 + $0x120] sm:$0xff]  ;;  %v418_v52 = vpack.c.bf16 %v113_v45, %v111_v44  ;;  %v252_v54 = vld [vmem:[#allocation8 + $0x148] sm:$0xff] }
  0x64   :  { %407 = vmatprep.subr.bf16.mxu0 %v406_v16  ;;  %v112_v53 = vld [vmem:[#allocation7 + $0x130] sm:$0xff]  ;;  %v254_v55 = vld [vmem:[#allocation8 + $0x158] sm:$0xff]  ;;  %v115_v56 = vld [vmem:[#allocation7 + $0x148] sm:$0xff]  ;;  %v484_v58 = vpack.c.bf16 %v249_v50, %v247_v49 }
  0x65   :  { %v117_v57 = vld [vmem:[#allocation7 + $0x158] sm:$0xff]  ;;  %v420_v59 = vpack.c.bf16 %v112_v53, %v110_v51  ;;  %v486_v60 = vpack.c.bf16 %v254_v55, %v252_v54  ;;  %v251_v61 = vld [vmem:[#allocation8 + $0x140] sm:$0xff]  ;;  %v253_v62 = vld [vmem:[#allocation8 + $0x150] sm:$0xff] }
  0x66   :  { %473 = vmatpush1.bf16.msra.mxu1 %v472_v22  ;;  %v114_v63 = vld [vmem:[#allocation7 + $0x140] sm:$0xff]  ;;  %v422_v0 = vpack.c.bf16 %v117_v57, %v115_v56  ;;  %v116_v1 = vld [vmem:[#allocation7 + $0x150] sm:$0xff]  ;;  %v256_v2 = vld [vmem:[#allocation8 + $0x168] sm:$0xff]  ;;  %v488_v6 = vpack.c.bf16 %v253_v62, %v251_v61 }
  0x67   :  { %409 = vmatpush1.bf16.msra.mxu0 %v408_v23  ;;  %475 = vmatprep.subr.bf16.mxu1 %v474_v24  ;;  %v258_v3 = vld [vmem:[#allocation8 + $0x178] sm:$0xff]  ;;  %v119_v4 = vld [vmem:[#allocation7 + $0x168] sm:$0xff]  ;;  %v255_v7 = vld [vmem:[#allocation8 + $0x160] sm:$0xff]  ;;  %v424_v8 = vpack.c.bf16 %v116_v1, %v114_v63 }
  0x68   :  { %411 = vmatprep.subr.bf16.mxu0 %v410_v28  ;;  %v121_v5 = vld [vmem:[#allocation7 + $0x178] sm:$0xff]  ;;  %v490_v9 = vpack.c.bf16 %v258_v3, %v256_v2  ;;  %v257_v10 = vld [vmem:[#allocation8 + $0x170] sm:$0xff]  ;;  %v118_v11 = vld [vmem:[#allocation7 + $0x160] sm:$0xff] }
  0x69   :  { %v120_v12 = vld [vmem:[#allocation7 + $0x170] sm:$0xff]  ;;  %v426_v13 = vpack.c.bf16 %v121_v5, %v119_v4  ;;  %v260_v14 = vld [vmem:[#allocation8 + $0x188] sm:$0xff]  ;;  %v262_v15 = vld [vmem:[#allocation8 + $0x198] sm:$0xff]  ;;  %v492_v20 = vpack.c.bf16 %v257_v10, %v255_v7  ;;  %v277_v4 = vlaneseq }
  0x6a   :  { %477 = vmatpush1.bf16.msra.mxu1 %v476_v34  ;;  %v210_v16 = vld [vmem:[#allocation5 + $0x8] sm:$0xff]  ;;  %v123_v17 = vld [vmem:[#allocation7 + $0x188] sm:$0xff]  ;;  %v428_v21 = vpack.c.bf16 %v120_v12, %v118_v11  ;;  %v494_v22 = vpack.c.bf16 %v262_v15, %v260_v14  ;;  %v259_v23 = vld [vmem:[#allocation8 + $0x180] sm:$0xff] }
  0x6b   :  { %413 = vmatpush1.bf16.msra.mxu0 %v412_v35  ;;  %479 = vmatprep.subr.bf16.mxu1 %v478_v36  ;;  %v125_v18 = vld [vmem:[#allocation7 + $0x198] sm:$0xff]  ;;  %v73_v19 = vld [vmem:[#allocation2 + $0x8] sm:$0xff]  ;;  %v261_v24 = vld [vmem:[#allocation8 + $0x190] sm:$0xff]  ;;  %v278_v5 = vshrl.u32 %v277_v4, 7 }
  0x6c   :  { %415 = vmatprep.subr.bf16.mxu0 %v414_v40  ;;  %351 = vmatprep.mubr.f32.mxu1 %v210_v16  ;;  %v122_v25 = vld [vmem:[#allocation7 + $0x180] sm:$0xff]  ;;  %v430_v26 = vpack.c.bf16 %v125_v18, %v123_v17  ;;  %v124_v27 = vld [vmem:[#allocation7 + $0x190] sm:$0xff]  ;;  %v264_v28 = vld [vmem:[#allocation8 + $0x1a8] sm:$0xff]  ;;  %v496_v32 = vpack.c.bf16 %v261_v24, %v259_v23 }
  0x6d   :  { %202 = vmatprep.mubr.f32.mxu0 %v73_v19  ;;  %v266_v29 = vld [vmem:[#allocation8 + $0x1b8] sm:$0xff]  ;;  %v127_v30 = vld [vmem:[#allocation7 + $0x1a8] sm:$0xff]  ;;  %v432_v33 = vpack.c.bf16 %v124_v27, %v122_v25  ;;  %v263_v35 = vld [vmem:[#allocation8 + $0x1a0] sm:$0xff] }
  0x6e   :  { %481 = vmatpush1.bf16.msra.mxu1 %v480_v46  ;;  %v129_v31 = vld [vmem:[#allocation7 + $0x1b8] sm:$0xff]  ;;  %v498_v34 = vpack.c.bf16 %v266_v29, %v264_v28  ;;  %v265_v36 = vld [vmem:[#allocation8 + $0x1b0] sm:$0xff]  ;;  %v126_v37 = vld [vmem:[#allocation7 + $0x1a0] sm:$0xff] }
  0x6f   :  { %417 = vmatpush1.bf16.msra.mxu0 %v416_v47  ;;  %483 = vmatprep.subr.bf16.mxu1 %v482_v48  ;;  %v434_v38 = vpack.c.bf16 %v129_v31, %v127_v30  ;;  %v128_v39 = vld [vmem:[#allocation7 + $0x1b0] sm:$0xff]  ;;  %v268_v40 = vld [vmem:[#allocation8 + $0x1c8] sm:$0xff]  ;;  %v270_v41 = vld [vmem:[#allocation8 + $0x1d8] sm:$0xff]  ;;  %v500_v44 = vpack.c.bf16 %v265_v36, %v263_v35 }
  0x70   :  { %419 = vmatprep.subr.bf16.mxu0 %v418_v52  ;;  %v131_v42 = vld [vmem:[#allocation7 + $0x1c8] sm:$0xff]  ;;  %v133_v43 = vld [vmem:[#allocation7 + $0x1d8] sm:$0xff]  ;;  %v436_v45 = vpack.c.bf16 %v128_v39, %v126_v37  ;;  %v502_v46 = vpack.c.bf16 %v270_v41, %v268_v40  ;;  %v267_v47 = vld [vmem:[#allocation8 + $0x1c0] sm:$0xff] }
  0x71   :  { %v269_v48 = vld [vmem:[#allocation8 + $0x1d0] sm:$0xff]  ;;  %v130_v49 = vld [vmem:[#allocation7 + $0x1c0] sm:$0xff]  ;;  %v438_v50 = vpack.c.bf16 %v133_v43, %v131_v42  ;;  %v272_v52 = vld [vmem:[#allocation8 + $0x1e8] sm:$0xff] }
  0x72   :  { %485 = vmatpush1.bf16.msra.mxu1 %v484_v58  ;;  %v132_v51 = vld [vmem:[#allocation7 + $0x1d0] sm:$0xff]  ;;  %v274_v53 = vld [vmem:[#allocation8 + $0x1f8] sm:$0xff]  ;;  %v135_v54 = vld [vmem:[#allocation7 + $0x1e8] sm:$0xff]  ;;  %v504_v56 = vpack.c.bf16 %v269_v48, %v267_v47 }
  0x73   :  { %421 = vmatpush1.bf16.msra.mxu0 %v420_v59  ;;  %487 = vmatprep.subr.bf16.mxu1 %v486_v60  ;;  %v137_v55 = vld [vmem:[#allocation7 + $0x1f8] sm:$0xff]  ;;  %v440_v57 = vpack.c.bf16 %v132_v51, %v130_v49  ;;  %v506_v58 = vpack.c.bf16 %v274_v53, %v272_v52  ;;  %v271_v59 = vld [vmem:[#allocation8 + $0x1e0] sm:$0xff]  ;;  %v273_v60 = vld [vmem:[#allocation8 + $0x1f0] sm:$0xff] }
  0x74   :  { %423 = vmatprep.subr.bf16.mxu0 %v422_v0  ;;  %v442_v61 = vpack.c.bf16 %v137_v55, %v135_v54  ;;  %v134_v62 = vld [vmem:[#allocation7 + $0x1e0] sm:$0xff]  ;;  %v136_v63 = vld [vmem:[#allocation7 + $0x1f0] sm:$0xff]  ;;  %v508_v0 = vpack.c.bf16 %v273_v60, %v271_v59 }
  0x75   :  { %v444_v1 = vpack.c.bf16 %v136_v63, %v134_v62  ;;  %v209_v2 = vld [vmem:[#allocation5] sm:$0xff]  ;;  %v72_v3 = vld [vmem:[#allocation2] sm:$0xff] }
  0x76   :  { %489 = vmatpush1.bf16.msra.mxu1 %v488_v6  ;;  %v279_v6 = vsub.s32 0, %v278_v5  ;;  %v275_v7 = vld [vmem:[%s748_s4] sm:$0x3] }
  0x77   :  { %425 = vmatpush1.bf16.msra.mxu0 %v424_v8  ;;  %491 = vmatprep.subr.bf16.mxu1 %v490_v9  ;;  %v283_v8 = vsub.s32 1, %v278_v5 }
  0x78   :  { %427 = vmatprep.subr.bf16.mxu0 %v426_v13  ;;  %v280_v9 = vrot.slane %v275_v7, %v279_v6 }
  0x79   :  { %v284_v10 = vrot.slane %v275_v7, %v283_v8 }
  0x7a   :  { %493 = vmatpush1.bf16.msra.mxu1 %v492_v20 }
  0x7b   :  { %429 = vmatpush1.bf16.msra.mxu0 %v428_v21  ;;  %495 = vmatprep.subr.bf16.mxu1 %v494_v22 }
  0x7c   :  { %431 = vmatprep.subr.bf16.mxu0 %v430_v26 }
  0x7e   :  { %497 = vmatpush1.bf16.msra.mxu1 %v496_v32 }
  0x7f   :  { %433 = vmatpush1.bf16.msra.mxu0 %v432_v33  ;;  %499 = vmatprep.subr.bf16.mxu1 %v498_v34 }
  0x80   :  { %435 = vmatprep.subr.bf16.mxu0 %v434_v38 }
  0x82   :  { %501 = vmatpush1.bf16.msra.mxu1 %v500_v44 }
  0x83   :  { %437 = vmatpush1.bf16.msra.mxu0 %v436_v45  ;;  %503 = vmatprep.subr.bf16.mxu1 %v502_v46 }
  0x84   :  { %439 = vmatprep.subr.bf16.mxu0 %v438_v50 }
  0x86   :  { %505 = vmatpush1.bf16.msra.mxu1 %v504_v56 }
  0x87   :  { %441 = vmatpush1.bf16.msra.mxu0 %v440_v57  ;;  %507 = vmatprep.subr.bf16.mxu1 %v506_v58 }
  0x88   :  { %443 = vmatprep.subr.bf16.mxu0 %v442_v61 }
  0x8a   :  { %509 = vmatpush1.bf16.msra.mxu1 %v508_v0 }
  0x8b   :  { %445 = vmatpush1.bf16.msra.mxu0 %v444_v1 }
  0x8d   :  { %352 = vmatmul.mubr.f32.vlgmr.msra.gmra.mrb[0].mxu1 %v209_v2 }
  0x8e   :  { %203 = vmatmul.mubr.f32.vlgmr.msra.gmra.mrb[0].mxu0 %v72_v3 }
 0x160   :  { %v353_v11 = vpop.f32.mrb[0].mxu1 }
 0x161   :  { %v354_v12 = vadd.f32 %v353_v11, %v280_v9  ;;  %v204_v13 = vpop.f32.mrb[0].mxu0  ;;  %v355_v14 = vpop.f32.mrb[1].mxu1 }
 0x162   :  { %358 = vst [vmem:[#allocation10] sm:$0xff] %v204_v13  ;;  %v356_v15 = vadd.f32 %v355_v14, %v284_v10  ;;  %v206_v16 = vpop.f32.mrb[1].mxu0 }
 0x163   :  { %361 = vst [vmem:[#allocation10 + $0x10] sm:$0xff] %v354_v12  ;;  %359 = vst [vmem:[#allocation10 + $0x8] sm:$0xff] %v206_v16 }
 0x164   :  { %362 = vst [vmem:[#allocation10 + $0x18] sm:$0xff] %v356_v15 }
 0x165   :  { %616 = shalt.err (!%p613_p8)
}
 0x166   :  { %s617_s19 = scalar_lea.hbm %s749_s5, 512 }
 0x167   :  { %p618_p9 = scmp.ne.s32.totalorder %s749_s5, %s617_s19  ;;  %p621_p10 = scmp.lt.u32.totalorder %s617_s19, %s749_s5 }
 0x169   :  { %p623_p11 = pnand %p621_p10, %p618_p9 }
 0x16b   :  { %626 = shalt.err (!%p623_p11)
}
 0x16c   :  { %374 = dma.vmem_to_hbm [thread:$0]  %s369_s16, 512, %s749_s5, [#allocation4], %s638_s0, %s638_s0, %s639_s21  }
 0x16d   :  { %633 = dma.done.wait [#allocation4], 512  }
 0x16e   :  { %634 = vsyncadd [#allocation4], 4294966784 }
 0x16f   :  { %378 = vsyncpa [#allocation3], 1 }
 0x170   :  { %379 = vsyncpa [#allocation6], 1 }
 0x171   :  { %380 = vsyncpa [#allocation9], 1 }
 0x172   :  { %381 = vsyncpa [#allocation4], 1 }

</bundles_post_ra>
